<compile_context>
chip_gen: v5e
topology: v5e:2x2
jax: 0.10.0
libtpu: 0.0.40
codegen_flags: <defaults>
</compile_context>

<pallas_src>
import jax
import jax.numpy as jnp
from jax.experimental import pallas as pl
from jax.experimental.pallas import tpu as pltpu

LANE = 128
SUBLANE = 8
MAX_BLOCK_ROWS = 4096   # 4096 * 128 * 4 B = 2 MiB per f32 buffer
MIN_GRID_STEPS = 4      # keep >= 2-4 grid steps so both v7x TCs stream / DMA overlaps


def swish_kernel(sp_ref, x_ref, o_ref):
    # sp_ref: (1,) precomputed softplus(beta) in SMEM
    # x_ref / o_ref: (block_rows, 128) tiles in VMEM (caller dtype)
    sp = sp_ref[0]
    xv = x_ref[...].astype(jnp.float32)
    z = xv * sp
    sig = jax.nn.sigmoid(z)                       # exact sigmoid (EUP exp), matches reference
    o_ref[...] = ((xv * sig) / 1.1).astype(o_ref.dtype)


def _choose_block_rows(rows):
    """Pick a block row count: <= MAX_BLOCK_ROWS, multiple of 8 sublanes,
    and small enough that the grid has >= MIN_GRID_STEPS steps when possible."""
    if rows <= SUBLANE:
        return rows                                  # single block == full dim (allowed)
    target = pl.cdiv(rows, MIN_GRID_STEPS)
    block = max(SUBLANE, min(MAX_BLOCK_ROWS, target))
    block = ((block + SUBLANE - 1) // SUBLANE) * SUBLANE   # satisfy the (8,128) rule
    return min(block, MAX_BLOCK_ROWS)


def swish_pallas(x, beta):
    """Elementwise Swish-with-learnable-beta, computed in a Pallas TPU kernel."""
    orig_shape = x.shape
    orig_dtype = x.dtype

    xf = x.reshape(-1)
    n = xf.shape[0]

    # Minimal pad: only make the flat length lane-dense (multiple of 128).
    pad = (-n) % LANE
    if pad:
        xf = jnp.pad(xf, (0, pad))
    rows = xf.shape[0] // LANE
    x2 = xf.reshape(rows, LANE)

    block_rows = _choose_block_rows(rows)
    grid = (pl.cdiv(rows, block_rows),)

    # Hoist softplus(beta) out of the kernel (numerically stable form).
    sp = jax.nn.softplus(jnp.asarray(beta, jnp.float32).reshape(-1)[0]).reshape(1)

    n_eff = rows * LANE
    itemsize = jnp.dtype(orig_dtype).itemsize
    cost = pl.CostEstimate(
        flops=4 * n_eff,
        transcendentals=n_eff,
        bytes_accessed=2 * n_eff * itemsize,
    )

    out2 = pl.pallas_call(
        swish_kernel,
        out_shape=jax.ShapeDtypeStruct((rows, LANE), orig_dtype),
        grid=grid,
        in_specs=[
            pl.BlockSpec(memory_space=pltpu.MemorySpace.SMEM),      # softplus(beta) scalar
            pl.BlockSpec((block_rows, LANE), lambda i: (i, 0)),     # x tile
        ],
        out_specs=pl.BlockSpec((block_rows, LANE), lambda i: (i, 0)),
        compiler_params=pltpu.CompilerParams(
            dimension_semantics=("parallel",)),
        cost_estimate=cost,
    )(sp, x2)

    out = out2.reshape(-1)
    if pad:
        out = out[:n]
    return out.reshape(orig_shape)


if __name__ == "__main__":
    key = jax.random.PRNGKey(0)
    # NCHW input, small shapes: batch=2, channels=4, spatial=16x16
    x = jax.random.normal(key, (2, 4, 16, 16), dtype=jnp.float32)
    beta = jnp.array([0.5], dtype=jnp.float32)  # same init as nn.Parameter(torch.tensor([0.5]))

    y = swish_pallas(x, beta)
    y = jax.block_until_ready(y)

    # Pure-JAX reference for a correctness sanity check.
    sp_ref = jax.nn.softplus(beta[0])
    y_ref = (x * jax.nn.sigmoid(x * sp_ref)) / 1.1
    assert y.shape == x.shape and y.dtype == x.dtype
    assert jnp.allclose(y, y_ref, atol=1e-5, rtol=1e-5), "mismatch vs reference"

    print("KERNEL_OK")
</pallas_src>

<mosaic_0001>
module attributes {stable_mosaic.version = 11 : i64} {
  func.func @swish_kernel(%arg0: i32, %arg1: memref<1xf32, #tpu.memory_space<smem>>, %arg2: memref<8x128xf32, #tpu.memory_space<vmem>>, %arg3: memref<8x128xf32, #tpu.memory_space<vmem>>) attributes {dimension_semantics = [#tpu.dimension_semantics<parallel>], iteration_bounds = array<i64: 2>, scalar_prefetch = 0 : i64, scratch_operands = 0 : i64, tpu.core_type = #tpu.core_type<tc>, window_params = [{transform_indices = @transform_0, window_bounds = array<i64: 1>}, {transform_indices = @transform_1, window_bounds = array<i64: 8, 128>}, {transform_indices = @transform_2, window_bounds = array<i64: 8, 128>}]} {
    %c0 = arith.constant 0 : index
    %0 = memref.load %arg1[%c0] : memref<1xf32, #tpu.memory_space<smem>>
    %c0_0 = arith.constant 0 : index
    %c0_1 = arith.constant 0 : index
    %1 = vector.load %arg2[%c0_0, %c0_1] : memref<8x128xf32, #tpu.memory_space<vmem>>, vector<8x128xf32>
    %2 = vector.broadcast %0 : f32 to vector<8x128xf32>
    %3 = arith.mulf %1, %2 : vector<8x128xf32>
    %4 = arith.negf %3 : vector<8x128xf32>
    %5 = math.exp %4 : vector<8x128xf32>
    %cst = arith.constant 1.000000e+00 : f32
    %6 = vector.broadcast %cst : f32 to vector<8x128xf32>
    %7 = arith.addf %6, %5 : vector<8x128xf32>
    %8 = arith.divf %6, %7 : vector<8x128xf32>
    %9 = arith.mulf %1, %8 : vector<8x128xf32>
    %cst_2 = arith.constant 1.100000e+00 : f32
    %10 = vector.broadcast %cst_2 : f32 to vector<8x128xf32>
    %11 = arith.divf %9, %10 : vector<8x128xf32>
    %c0_3 = arith.constant 0 : index
    %c0_4 = arith.constant 0 : index
    %12 = vector.load %arg3[%c0_3, %c0_4] : memref<8x128xf32, #tpu.memory_space<vmem>>, vector<8x128xf32>
    tpu.vector_store %arg3[%c0_3, %c0_4], %11 {strides = array<i32>} : memref<8x128xf32, #tpu.memory_space<vmem>>, vector<8x128xf32>,
    return
  }
  func.func @transform_0(%arg0: i32) -> i32 {
    %c0_i32 = arith.constant 0 : i32
    %c0_i32_0 = arith.constant 0 : i32
    return %c0_i32 : i32
  }
  func.func @transform_1(%arg0: i32) -> (i32, i32) {
    %c0_i32 = arith.constant 0 : i32
    %c0_i32_0 = arith.constant 0 : i32
    return %arg0, %c0_i32 : i32, i32
  }
  func.func @transform_2(%arg0: i32) -> (i32, i32) {
    %c0_i32 = arith.constant 0 : i32
    %c0_i32_0 = arith.constant 0 : i32
    return %arg0, %c0_i32 : i32, i32
  }
}

</mosaic_0001>

<bundles_post_ra>
// kernel: tpu_custom_call.1
= control target key start
LH: loop header
LB: loop body
LE: loop exit
PB: predicated region body
PF: predicated region fallthrough
CT: control target
= control target key end

     0   :  { %s595_s0 = inlined_call_operand.<no memory space> [shape: f32[1], index: 0, kind: input, shape index: {}]   ;;  %s596_s1 = inlined_call_operand.hbm [shape: f32[16,128], index: 1, kind: input, shape index: {}]   ;;  %s597_s2 = inlined_call_operand.hbm [shape: f32[16,128], index: 2, kind: output, shape index: {}]  }
   0x1   :  { %7 = sst [smem:[#allocation2]] %s595_s0 }
   0x2   :  { %8 = vsyncpa [#allocation4], 0 }
   0x3   :  { %10 = vsyncpa [#allocation4 + $0x1], 0 }
   0x4   :  { %11 = vsyncpa [#allocation5], 0 }
   0x5   :  { %13 = vsyncpa [#allocation5 + $0x1], 0  ;;  %s464_s11 = smov 0   ;;  %s466_s12 = smov 0  }
   0x6   :  { %s468_s13 = smov 0   ;;  %s470_s14 = smov 0  }
   0x7 LB: > { %s485_s0 = sadd.s32 4294967295, %s443_s14   ;;  %s281_s15 = sadd.s32 4294967294, %s443_s14   ;;  %s443_s14 = sphi %s470_s14, %s607_s14   ;;  %s439_s13 = sphi %s468_s13, %s606_s13   ;;  %s435_s12 = sphi %s466_s12, %s605_s12   ;;  %s431_s11 = sphi %s464_s11, %s604_s11  }
   0x8   : > { %s489_s16 = sadd.s32 1, %s443_s14   ;;  %s47_s17 = sadd.s32 1, %s439_s13 }
   0x9   : > { %s44_s18 = ssub.s32 %s443_s14, %s489_s16  ;;  %p54_p0 = scmp.ne.s32.totalorder %s439_s13, %s435_s12 }
   0xa   : > { %p45_p1 = scmp.eq.s32.totalorder %s44_s18, 0  ;;  %p55_p2 = scmp.eq.s32.totalorder %s443_s14, 0 }
   0xb   : > { %p60_p3 = scmp.ne.s32.totalorder %s435_s12, %s431_s11  ;;  %p61_p4 = scmp.eq.s32.totalorder %s485_s0, 0 }
   0xc   : > { %s501_s19 = scalar_select %p45_p1, %s439_s13, %s47_s17  }
   0xd   : > { %p503_p5 = por %p55_p2, %p54_p0  ;;  %p507_p6 = por %p61_p4, %p60_p3 }
   0xe   : > { %p84_p7 = scmp.eq.s32.totalorder %s485_s0, 1  ;;  %p90_p8 = scmp.eq.s32.totalorder %s281_s15, 1 }
   0xf   : > { %p306_p10 = scmp.lt.s32.totalorder %s443_s14, 2  ;;  %s113_s24 = sand.u32 1, %s439_s13  }
  0x10   : > { %p514_p11 = por %p84_p7, %p54_p0  ;;  %p518_p12 = por %p90_p8, %p60_p3 }
  0x11   : > { %s285_s25 = sshll.u32 %s443_s14, 3  ;;  %s284_s26 = sshll.u32 %s113_s24, 3 }
  0x12   : > { %s121_s29 = scalar_lea.hbm %s596_s1, %s285_s25  ;;  %s117_s3 = scalar_lea.vmem [#allocation3], %s284_s26 }
  0x13   : > { %s123_s30 = sshll.u32 %s121_s29, 4  ;;  %s125_s4 = sshll.u32 %s117_s3, 4  ;;  %s124_s30 = int_to_ptr.hbm [resolvable:$true] %s123_s30  ;;  %s126_s4 = int_to_ptr.vmem [resolvable:$true] %s125_s4 }
  0x14   : > { %p529_p13 = pnand %p306_p10, %p503_p5  ;;  %p286_p0 = scmp.ge.s32.totalorder %s443_s14, 1 }
  0x15   : > { %p130_p1 = scmp.lt.s32.totalorder %s443_s14, 3  ;;  %s114_s6 = scalar_lea.sflag [#allocation4], %s113_s24 }
  0x16   : > { %s347_s7 = sshra.s32 %s124_s30, 4  ;;  %p351_p3 = pneg %p529_p13  ;;  %s348_s7 = int_to_ptr.hbm [resolvable:$true] %s347_s7 }
  0x17   : > { %s349_s8 = scalar_lea.hbm %s348_s7, 8  ;;  %s354_s15 = scalar_lea.hbm %s596_s1, 16 }
  0x18   : > { %p350_p2 = scmp.ne.s32.totalorder %s348_s7, %s349_s8  ;;  %p355_p5 = scmp.lt.s32.totalorder %s348_s7, %s596_s1 }
  0x19   : > { %p356_p8 = scmp.lt.s32.totalorder %s354_s15, %s349_s8 }
  0x1a   : > { %p352_p4 = pnand %p351_p3, %p350_p2 }
  0x1b   : > { %p357_p10 = por %p356_p8, %p355_p5 }
  0x1c   : > { %p353_p7 = pneg %p352_p4 }
  0x1e   : > { %p358_p9 = pnand %p357_p10, %p353_p7 }
  0x20   : > { %361 = shalt.err (!%p358_p9)
}
  0x21   : > { %301 = dma.hbm_to_vmem [thread:$0]  (!%p529_p13), %s124_s30, 128, %s126_s4, %s114_s6  }
  0x22   : > { %p131_p2 = pnand %p286_p0, %p130_p1 }
  0x23   : > { %s550_s20 = sand.u32 (!%p131_p2), 1, %s435_s12  }
  0x24   : > { %134 = sbr.rel (%p131_p2) target bundleno = 86 (0x56), region = 28  ;;  %s287_s24 = sshll.u32 (!%p131_p2), %s550_s20, 3 }
  0x25   : > { %s137_s25 = scalar_lea.sflag (!%p131_p2), [#allocation4], %s550_s20  ;;  %s140_s26 = scalar_lea.vmem (!%p131_p2), [#allocation3], %s287_s24 }
  0x29   : > { %422 = dma.done.wait (%p507_p6), %s137_s25, 128  }
  0x2a   : > { %424 = vsyncadd (%p507_p6), %s137_s25, 4294967168  ;;  %s162_s27 = sld [smem:[#allocation2]]  ;;  %v163_v0 = vld [vmem:[%s140_s26] sm:$0xff]  ;;  %v445_v4 = vmov 1.1   ;;  %s291_s21 = sshll.u32 %s485_s0, 3 }
  0x2b   : > { %341 = vrcp.f32 %v445_v4  ;;  %s206_s30 = scalar_lea.hbm %s597_s2, %s291_s21  ;;  %s161_s3 = scalar_lea.vmem [#allocation6], %s287_s24 }
  0x2c   : > { %s208_s4 = sshll.u32 %s161_s3, 4  ;;  %s210_s0 = sshll.u32 %s206_s30, 4  ;;  %s209_s4 = int_to_ptr.vmem [resolvable:$true] %s208_s4  ;;  %s211_s0 = int_to_ptr.hbm [resolvable:$true] %s210_s0 }
  0x2d   : > { %s196_s5 = scalar_lea.sflag [#allocation5], %s550_s20  ;;  %s391_s6 = sshra.s32 %s211_s0, 4  ;;  %s392_s6 = int_to_ptr.hbm [resolvable:$true] %s391_s6 }
  0x2e   : > { %s393_s7 = scalar_lea.hbm %s392_s6, 8  ;;  %s397_s10 = scalar_lea.hbm %s597_s2, 16 }
  0x2f   : > { %p394_p6 = scmp.ne.s32.totalorder %s392_s6, %s393_s7  ;;  %p398_p0 = scmp.lt.s32.totalorder %s392_s6, %s597_s2 }
  0x30   : > { %v164_v1 = vstv %s162_s27  ;;  %p399_p1 = scmp.lt.s32.totalorder %s397_s10, %s393_s7 }
  0x31   : > { %v165_v2 = vmul.f32 %v164_v1, %v163_v0  ;;  %v342_v5 = vpop.eup %341  ;;  %p395_p9 = pnand %p394_p6, %p514_p11 }
  0x32   : > { %v187_v8 = vmul.f32 1.1, %v342_v5  ;;  %vm191_vm4 = vweird.f32 %v342_v5  ;;  %p400_p3 = por %p399_p1, %p398_p0 }
  0x33   : > { %v289_v3 = vmul.f32 -1.442695, %v165_v2  ;;  %p396_p13 = pneg %p395_p9 }
  0x34   : > { %v188_v9 = vsub.f32 1.0, %v187_v8 }
  0x35   : > { %343 = vpow2.f32 %v289_v3  ;;  %p401_p4 = pnand %p400_p3, %p396_p13 }
  0x36   : > { %v189_v13 = vmul.f32 %v342_v5, %v188_v9 }
  0x38   : > { %v190_v18 = vadd.f32 %v342_v5, %v189_v13 }
  0x3a   : > { %v192_v22 = vsel %vm191_vm4, %v342_v5, %v190_v18 }
  0x3b   : > { %v344_v6 = vpop.eup %343 }
  0x3c   : > { %v169_v7 = vadd.f32 1.0, %v344_v6 }
  0x3e   : > { %345 = vrcp.f32 %v169_v7  ;;  %v181_v12 = vand.u32 2147483648, %v169_v7  ;;  %vm175_vm0 = vweird.f32 %v169_v7  ;;  %v179_v15 = vand.u32 2147483647, %v169_v7 }
  0x40   : > { %v182_v17 = vor.u32 1.1754944e-38, %v181_v12  ;;  %vm180_vm3 = vcmp.eq.f32.partialorder %v179_v15, 8.507059e+37 }
  0x44   : > { %v346_v10 = vpop.eup %345 }
  0x45   : > { %v171_v11 = vmul.f32 %v346_v10, %v169_v7  ;;  %vm176_vm1 = vweird.f32 %v346_v10 }
  0x46   : > { %vm177_vm2 = vmor %vm175_vm0, %vm176_vm1 }
  0x47   : > { %v172_v14 = vsub.f32 1.0, %v171_v11 }
  0x49   : > { %v173_v16 = vmul.f32 %v346_v10, %v172_v14 }
  0x4b   : > { %v174_v19 = vadd.f32 %v346_v10, %v173_v16 }
  0x4d   : > { %v178_v20 = vsel %vm177_vm2, %v346_v10, %v174_v19 }
  0x4e   : > { %v183_v21 = vsel %vm180_vm3, %v182_v17, %v178_v20 }
  0x4f   : > { %v185_v23 = vmul.f32 %v183_v21, %v163_v0 }
  0x51   : > { %v193_v24 = vmul.f32 %v192_v22, %v185_v23 }
  0x53   : > { %194 = vst [vmem:[%s161_s3] sm:$0xff] %v193_v24 }
  0x54   : > { %404 = shalt.err (!%p401_p4)
}
  0x55   : > { %296 = dma.vmem_to_hbm [thread:$0]  (%p514_p11), %s209_s4, 128, %s211_s0, %s196_s5  }
  0x56 PF: > { %s222_s18 = sand.u32 1, %s431_s11   ;;  %p603_p7 = scmp.ge.s32.totalorder %s443_s14, 2 }
  0x57   : > { %s223_s20 = scalar_lea.sflag [#allocation5], %s222_s18 }
  0x58   : > { %p303_p5 = pnand %p603_p7, %p518_p12 }
  0x5a   : > { %p304_p8 = pneg %p303_p5 }
  0x5c   : > { %426 = dma.done.wait (%p304_p8), %s223_s20, 128  }
  0x5d   : > { %428 = vsyncadd (%p304_p8), %s223_s20, 4294967168  ;;  %p16_p10 = scmp.ge.s32.totalorder %s489_s16, 4   ;;  %s604_s11 = smov %s435_s12 }
  0x5e   : > { %s605_s12 = smov %s439_s13  ;;  %s606_s13 = smov %s501_s19 }
  0x5f   : > { %s607_s14 = smov %s489_s16  ;;  %18 = sbr.rel (!%p16_p10) target bundleno = 7 (0x7), region = 73 }
  0x64   :  { %229 = vsyncpa [#allocation4], 1 }
  0x65   :  { %231 = vsyncpa [#allocation4 + $0x1], 1 }
  0x66   :  { %232 = vsyncpa [#allocation5], 1 }
  0x67   :  { %234 = vsyncpa [#allocation5 + $0x1], 1 }

</bundles_post_ra>
